<compile_context>
chip_gen: v6e
topology: v6e:2x2x1
jax: 0.10.0
libtpu: 0.0.40
codegen_flags: <defaults>
</compile_context>

<pallas_src>
import functools

import jax
import jax.numpy as jnp
from jax.experimental import pallas as pl
from jax.experimental.pallas import tpu as pltpu

_LANE = 128


def _round_up(x, m):
    return (x + m - 1) // m * m


def _choose_tile(s, cin, cout, budget_bytes=8 * 1024 * 1024):
    """Pick the flattened-spatial tile width TM.

    Double-buffered per-step footprint is ~2*(cin+cout)*TM*4 bytes; cap TM so
    that stays under `budget_bytes` (well inside v5e's 16 MiB scoped-VMEM
    default and v7x's 64 MiB physical VMEM).  Prefer a TM that divides s so no
    HBM pad / output-slice copies are needed.  Returns (tm, s_pad, n_tiles).
    """
    cap = max(_LANE, (budget_bytes // (2 * (cin + cout) * 4)) // _LANE * _LANE)
    if s <= cap:
        return s, s, 1                         # one full-extent tile, no padding
    t = cap
    while t >= _LANE:                          # largest lane-aligned divisor of s
        if s % t == 0:
            return t, s, s // t
        t -= _LANE
    s_pad = _round_up(s, cap)                  # rare fallback: pad
    return cap, s_pad, s_pad // cap


# ---------------------------------------------------------------------------
# Kernels
# ---------------------------------------------------------------------------

def _stats_kernel(x_ref, w_ref, sum_ref, sumsq_ref):
    """Pass 1 (recompute variant): per-batch per-channel sum / sum-of-squares."""
    @pl.when(pl.program_id(1) == 0)
    def _():
        sum_ref[...] = jnp.zeros_like(sum_ref)
        sumsq_ref[...] = jnp.zeros_like(sumsq_ref)

    # x_ref: (1, Cin, TM), w_ref: (Cout, Cin)  ->  y: (Cout, TM), lane-dense.
    y = jnp.dot(w_ref[...], x_ref[0], preferred_element_type=jnp.float32)
    # Cross-lane reductions land on the XLU slot; accumulators stay resident
    # across the "arbitrary" tile axis.
    sum_ref[...] += jnp.sum(y, axis=1, keepdims=True)[None]
    sumsq_ref[...] += jnp.sum(y * y, axis=1, keepdims=True)[None]


def _stats_store_kernel(x_ref, w_ref, y_ref, sum_ref, sumsq_ref):
    """Pass 1 (materialize variant): also writes y = W @ x for pass 2 to reuse."""
    @pl.when(pl.program_id(1) == 0)
    def _():
        sum_ref[...] = jnp.zeros_like(sum_ref)
        sumsq_ref[...] = jnp.zeros_like(sumsq_ref)

    y = jnp.dot(w_ref[...], x_ref[0], preferred_element_type=jnp.float32)
    y_ref[0] = y.astype(y_ref.dtype)
    sum_ref[...] += jnp.sum(y, axis=1, keepdims=True)[None]
    sumsq_ref[...] += jnp.sum(y * y, axis=1, keepdims=True)[None]


def _norm_recompute_kernel(x_ref, w_ref, scale_ref, shift_ref, o_ref):
    """Pass 2 (recompute): y = W @ x, then the folded BN affine."""
    y = jnp.dot(w_ref[...], x_ref[0], preferred_element_type=jnp.float32)
    o_ref[0] = (y * scale_ref[...] + shift_ref[...]).astype(o_ref.dtype)


def _norm_affine_kernel(y_ref, scale_ref, shift_ref, o_ref):
    """Pass 2 (materialized y): just the folded BN affine."""
    o_ref[0] = (y_ref[0] * scale_ref[...] + shift_ref[...]).astype(o_ref.dtype)


# ---------------------------------------------------------------------------
# Wrapper
# ---------------------------------------------------------------------------

def pixel_unshuffle(x, scale):
    # (B, C, H, W) -> (B, C*scale^2, H//scale, W//scale), matching PyTorch's
    # reshape/permute ordering.
    b, c, h, w = x.shape
    assert h % scale == 0 and w % scale == 0
    oh, ow = h // scale, w // scale
    x = x.reshape(b, c, oh, scale, ow, scale)
    x = jnp.transpose(x, (0, 1, 3, 5, 2, 4))
    return x.reshape(b, c * scale * scale, oh, ow)


@functools.partial(jax.jit, static_argnums=(2,))
def downsample_block(x, params, scale):
    """x: (B, C, H, W) f32 NCHW. Returns (B, Cout, H//scale, W//scale)."""
    w, b, gamma, beta = params      # conv bias cancels under training-mode BN
    del b
    cout, cin = w.shape[0], w.shape[1]

    xu = pixel_unshuffle(x, scale)                    # (B, Cin, oh, ow)
    bsz, _, oh, ow = xu.shape
    s = oh * ow
    x3 = xu.reshape(bsz, cin, s)                      # free reshape, channel-major

    tm, s_pad, nt = _choose_tile(s, cin, cout)
    if s_pad != s:                                    # rare fallback only
        x3 = jnp.pad(x3, ((0, 0), (0, 0), (0, s_pad - s)))

    w2 = w[:, :, 0, 0]                                # (Cout, Cin)
    materialize_y = cin > 2 * cout                    # pass-2 reads Cout*S vs Cin*S

    x_spec = pl.BlockSpec((1, cin, tm), lambda bi, ti: (bi, 0, ti))
    w_spec = pl.BlockSpec((cout, cin), lambda bi, ti: (0, 0))
    y_spec = pl.BlockSpec((1, cout, tm), lambda bi, ti: (bi, 0, ti))
    stat_spec = pl.BlockSpec((1, cout, 1), lambda bi, ti: (bi, 0, 0))
    vec_spec = pl.BlockSpec((cout, 1), lambda bi, ti: (0, 0))
    stat_shape = jax.ShapeDtypeStruct((bsz, cout, 1), jnp.float32)

    def cparams(sem):
        # Footprint formula keeps usage well under 16 MiB, so this request is
        # safe on v5e/v6e/v7x alike.
        return pltpu.CompilerParams(dimension_semantics=sem,
                                    vmem_limit_bytes=32 * 1024 * 1024)

    # ---- pass 1: per-batch partial sum / sumsq (batch axis "parallel") ------
    if materialize_y:
        y3, sums_b, sumsq_b = pl.pallas_call(
            _stats_store_kernel,
            out_shape=(jax.ShapeDtypeStruct((bsz, cout, s_pad), jnp.float32),
                       stat_shape, stat_shape),
            grid=(bsz, nt),
            in_specs=[x_spec, w_spec],
            out_specs=(y_spec, stat_spec, stat_spec),
            compiler_params=cparams(("parallel", "arbitrary")),
        )(x3, w2)
    else:
        sums_b, sumsq_b = pl.pallas_call(
            _stats_kernel,
            out_shape=(stat_shape, stat_shape),
            grid=(bsz, nt),
            in_specs=[x_spec, w_spec],
            out_specs=(stat_spec, stat_spec),
            compiler_params=cparams(("parallel", "arbitrary")),
        )(x3, w2)

    # ---- tiny JAX epilogue: cross-batch reduce, fold BN into scale/shift ----
    m_total = jnp.float32(bsz * s)                    # true count (pad cols are 0)
    mean = jnp.sum(sums_b, axis=0) / m_total          # (Cout, 1)
    var = jnp.sum(sumsq_b, axis=0) / m_total - mean * mean
    # E[y^2]-E[y]^2 can go slightly negative from cancellation; clamp.
    # TODO(synk): switch to a centered / Welford pass if |mean| >> std at scale.
    var = jnp.maximum(var, 0.0)
    inv = jax.lax.rsqrt(var + 1e-5)
    scale_c = gamma.reshape(cout, 1) * inv
    shift_c = beta.reshape(cout, 1) - mean * scale_c

    # ---- pass 2: folded BN affine, lane-dense output, megacore-parallel -----
    out_shape = jax.ShapeDtypeStruct((bsz, cout, s_pad), jnp.float32)
    if materialize_y:
        out3 = pl.pallas_call(
            _norm_affine_kernel,
            out_shape=out_shape,
            grid=(bsz, nt),
            in_specs=[y_spec, vec_spec, vec_spec],
            out_specs=y_spec,
            compiler_params=cparams(("parallel", "parallel")),
        )(y3, scale_c, shift_c)
    else:
        out3 = pl.pallas_call(
            _norm_recompute_kernel,
            out_shape=out_shape,
            grid=(bsz, nt),
            in_specs=[x_spec, w_spec, vec_spec, vec_spec],
            out_specs=y_spec,
            compiler_params=cparams(("parallel", "parallel")),
        )(x3, w2, scale_c, shift_c)

    if s_pad != s:
        out3 = out3[:, :, :s]
    return out3.reshape(bsz, cout, oh, ow)


# ---------------------------------------------------------------------------
# Params / reference / demo
# ---------------------------------------------------------------------------

def init_params(key, input_channels, output_channels, scale):
    # Conv2d(in=input_channels*scale^2, out=output_channels, k=1) weights,
    # deterministic init; BN gamma=1, beta=0 (PyTorch defaults, training mode).
    cin = input_channels * scale * scale
    kw, kb = jax.random.split(key)
    bound = 1.0 / jnp.sqrt(cin)  # 1x1 kernel fan_in
    w = jax.random.uniform(kw, (output_channels, cin, 1, 1),
                           minval=-bound, maxval=bound, dtype=jnp.float32)
    b = jax.random.uniform(kb, (output_channels,),
                           minval=-bound, maxval=bound, dtype=jnp.float32)
    gamma = jnp.ones((output_channels,), jnp.float32)
    beta = jnp.zeros((output_channels,), jnp.float32)
    return (w, b, gamma, beta)


def _reference(x, params, scale):
    # Pure-JAX reference: pixel-unshuffle -> 1x1 conv (with bias) -> BN (batch
    # stats, biased var, eps=1e-5).
    w, b, gamma, beta = params
    xu = pixel_unshuffle(x, scale)
    y = jnp.einsum('bchw,oc->bohw', xu, w[:, :, 0, 0]) + b[None, :, None, None]
    mean = jnp.mean(y, axis=(0, 2, 3), keepdims=True)
    var = jnp.mean((y - mean) ** 2, axis=(0, 2, 3), keepdims=True)
    return (gamma[None, :, None, None] * (y - mean) * jax.lax.rsqrt(var + 1e-5)
            + beta[None, :, None, None])


if __name__ == "__main__":
    key = jax.random.PRNGKey(0)
    configs = [
        # (scale, input_channels, output_channels, B, H, W)
        (2, 4, 8, 2, 16, 16),   # cin == 2*cout -> recompute-in-pass-2 path
        (2, 4, 4, 2, 16, 16),   # cin  > 2*cout -> materialize-y path
    ]
    for idx, (scale, ic, oc, B, H, W) in enumerate(configs):
        key, kx, kp = jax.random.split(key, 3)
        x = jax.random.normal(kx, (B, ic, H, W), dtype=jnp.float32)
        params = init_params(kp, ic, oc, scale)

        out = jax.block_until_ready(downsample_block(x, params, scale))
        assert out.shape == (B, oc, H // scale, W // scale)

        ref = _reference(x, params, scale)
        assert jnp.allclose(out, ref, atol=1e-3, rtol=1e-3), f"mismatch cfg {idx}"

    print("KERNEL_OK")
</pallas_src>

<mosaic_0001>
module attributes {stable_mosaic.version = 11 : i64} {
  func.func @_stats_kernel(%arg0: i32, %arg1: i32, %arg2: memref<1x16x64xf32, #tpu.memory_space<vmem>>, %arg3: memref<8x16xf32, #tpu.memory_space<vmem>>, %arg4: memref<1x8x1xf32, #tpu.memory_space<vmem>>, %arg5: memref<1x8x1xf32, #tpu.memory_space<vmem>>) attributes {dimension_semantics = [#tpu.dimension_semantics<parallel>, #tpu.dimension_semantics<arbitrary>], iteration_bounds = array<i64: 2, 1>, scalar_prefetch = 0 : i64, scratch_operands = 0 : i64, tpu.core_type = #tpu.core_type<tc>, window_params = [{transform_indices = @transform_0, window_bounds = array<i64: 1, 16, 64>}, {pipeline_mode = #tpu.pipeline_mode<synchronous>, transform_indices = @transform_1, window_bounds = array<i64: 8, 16>}, {transform_indices = @transform_2, window_bounds = array<i64: 1, 8, 1>}, {transform_indices = @transform_3, window_bounds = array<i64: 1, 8, 1>}]} {
    %c0_i32 = arith.constant 0 : i32
    %0 = arith.cmpi eq, %arg1, %c0_i32 : i32
    %1 = arith.extui %0 : i1 to i32
    %c0_i32_0 = arith.constant 0 : i32
    %2 = arith.cmpi ne, %1, %c0_i32_0 : i32
    scf.if %2 {
      %cst_19 = arith.constant 0.000000e+00 : f32
      %20 = vector.broadcast %cst_19 : f32 to vector<1x8x1xf32>
      %c0_20 = arith.constant 0 : index
      %c0_21 = arith.constant 0 : index
      %c0_22 = arith.constant 0 : index
      %21 = vector.load %arg4[%c0_20, %c0_21, %c0_22] : memref<1x8x1xf32, #tpu.memory_space<vmem>>, vector<1x8x1xf32>
      tpu.vector_store %arg4[%c0_20, %c0_21, %c0_22], %20 {strides = array<i32>} : memref<1x8x1xf32, #tpu.memory_space<vmem>>, vector<1x8x1xf32>,
      %cst_23 = arith.constant 0.000000e+00 : f32
      %22 = vector.broadcast %cst_23 : f32 to vector<1x8x1xf32>
      %c0_24 = arith.constant 0 : index
      %c0_25 = arith.constant 0 : index
      %c0_26 = arith.constant 0 : index
      %23 = vector.load %arg5[%c0_24, %c0_25, %c0_26] : memref<1x8x1xf32, #tpu.memory_space<vmem>>, vector<1x8x1xf32>
      tpu.vector_store %arg5[%c0_24, %c0_25, %c0_26], %22 {strides = array<i32>} : memref<1x8x1xf32, #tpu.memory_space<vmem>>, vector<1x8x1xf32>,
    } else {
    }
    %c0 = arith.constant 0 : index
    %c0_1 = arith.constant 0 : index
    %3 = vector.load %arg3[%c0, %c0_1] : memref<8x16xf32, #tpu.memory_space<vmem>>, vector<8x16xf32>
    %c0_2 = arith.constant 0 : index
    %c0_3 = arith.constant 0 : index
    %c0_4 = arith.constant 0 : index
    %4 = vector.load %arg2[%c0_2, %c0_3, %c0_4] : memref<1x16x64xf32, #tpu.memory_space<vmem>>, vector<1x16x64xf32>
    %5 = vector.shape_cast %4 : vector<1x16x64xf32> to vector<16x64xf32>
    %cst = arith.constant dense<0.000000e+00> : vector<8x64xf32>
    %6 = tpu.matmul %3, %5, %cst {dimension_numbers = #tpu.dot_dimension_numbers<[1], [0], [0], [1], [0, 0, 1, 1], [], []>} : vector<8x16xf32>, vector<16x64xf32>, vector<8x64xf32> -> vector<8x64xf32>
    %c0_5 = arith.constant 0 : index
    %c0_6 = arith.constant 0 : index
    %c0_7 = arith.constant 0 : index
    %7 = vector.load %arg4[%c0_5, %c0_6, %c0_7] : memref<1x8x1xf32, #tpu.memory_space<vmem>>, vector<1x8x1xf32>
    %cst_8 = arith.constant dense<0.000000e+00> : vector<8xf32>
    %8 = vector.multi_reduction <add>, %6, %cst_8 [1] : vector<8x64xf32> to vector<8xf32>
    %9 = vector.shape_cast %8 : vector<8xf32> to vector<8x1xf32>
    %10 = vector.shape_cast %9 : vector<8x1xf32> to vector<1x8x1xf32>
    %11 = arith.addf %7, %10 : vector<1x8x1xf32>
    %c0_9 = arith.constant 0 : index
    %c0_10 = arith.constant 0 : index
    %c0_11 = arith.constant 0 : index
    %12 = vector.load %arg4[%c0_9, %c0_10, %c0_11] : memref<1x8x1xf32, #tpu.memory_space<vmem>>, vector<1x8x1xf32>
    tpu.vector_store %arg4[%c0_9, %c0_10, %c0_11], %11 {strides = array<i32>} : memref<1x8x1xf32, #tpu.memory_space<vmem>>, vector<1x8x1xf32>,
    %c0_12 = arith.constant 0 : index
    %c0_13 = arith.constant 0 : index
    %c0_14 = arith.constant 0 : index
    %13 = vector.load %arg5[%c0_12, %c0_13, %c0_14] : memref<1x8x1xf32, #tpu.memory_space<vmem>>, vector<1x8x1xf32>
    %14 = arith.mulf %6, %6 : vector<8x64xf32>
    %cst_15 = arith.constant dense<0.000000e+00> : vector<8xf32>
    %15 = vector.multi_reduction <add>, %14, %cst_15 [1] : vector<8x64xf32> to vector<8xf32>
    %16 = vector.shape_cast %15 : vector<8xf32> to vector<8x1xf32>
    %17 = vector.shape_cast %16 : vector<8x1xf32> to vector<1x8x1xf32>
    %18 = arith.addf %13, %17 : vector<1x8x1xf32>
    %c0_16 = arith.constant 0 : index
    %c0_17 = arith.constant 0 : index
    %c0_18 = arith.constant 0 : index
    %19 = vector.load %arg5[%c0_16, %c0_17, %c0_18] : memref<1x8x1xf32, #tpu.memory_space<vmem>>, vector<1x8x1xf32>
    tpu.vector_store %arg5[%c0_16, %c0_17, %c0_18], %18 {strides = array<i32>} : memref<1x8x1xf32, #tpu.memory_space<vmem>>, vector<1x8x1xf32>,
    return
  }
  func.func @transform_0(%arg0: i32, %arg1: i32) -> (i32, i32, i32) {
    %c0_i32 = arith.constant 0 : i32
    %c0_i32_0 = arith.constant 0 : i32
    return %arg0, %c0_i32, %arg1 : i32, i32, i32
  }
  func.func @transform_1(%arg0: i32, %arg1: i32) -> (i32, i32) {
    %c0_i32 = arith.constant 0 : i32
    %c0_i32_0 = arith.constant 0 : i32
    %c0_i32_1 = arith.constant 0 : i32
    return %c0_i32, %c0_i32_0 : i32, i32
  }
  func.func @transform_2(%arg0: i32, %arg1: i32) -> (i32, i32, i32) {
    %c0_i32 = arith.constant 0 : i32
    %c0_i32_0 = arith.constant 0 : i32
    %c0_i32_1 = arith.constant 0 : i32
    return %arg0, %c0_i32, %c0_i32_0 : i32, i32, i32
  }
  func.func @transform_3(%arg0: i32, %arg1: i32) -> (i32, i32, i32) {
    %c0_i32 = arith.constant 0 : i32
    %c0_i32_0 = arith.constant 0 : i32
    %c0_i32_1 = arith.constant 0 : i32
    return %arg0, %c0_i32, %c0_i32_0 : i32, i32, i32
  }
}

module attributes {stable_mosaic.version = 11 : i64} {
  func.func @_norm_recompute_kernel(%arg0: i32, %arg1: i32, %arg2: memref<1x16x64xf32, #tpu.memory_space<vmem>>, %arg3: memref<8x16xf32, #tpu.memory_space<vmem>>, %arg4: memref<8x1xf32, #tpu.memory_space<vmem>>, %arg5: memref<8x1xf32, #tpu.memory_space<vmem>>, %arg6: memref<1x8x64xf32, #tpu.memory_space<vmem>>) attributes {dimension_semantics = [#tpu.dimension_semantics<parallel>, #tpu.dimension_semantics<parallel>], iteration_bounds = array<i64: 2, 1>, scalar_prefetch = 0 : i64, scratch_operands = 0 : i64, tpu.core_type = #tpu.core_type<tc>, window_params = [{transform_indices = @transform_0, window_bounds = array<i64: 1, 16, 64>}, {pipeline_mode = #tpu.pipeline_mode<synchronous>, transform_indices = @transform_1, window_bounds = array<i64: 8, 16>}, {pipeline_mode = #tpu.pipeline_mode<synchronous>, transform_indices = @transform_2, window_bounds = array<i64: 8, 1>}, {pipeline_mode = #tpu.pipeline_mode<synchronous>, transform_indices = @transform_3, window_bounds = array<i64: 8, 1>}, {transform_indices = @transform_4, window_bounds = array<i64: 1, 8, 64>}]} {
    %c0 = arith.constant 0 : index
    %c0_0 = arith.constant 0 : index
    %0 = vector.load %arg3[%c0, %c0_0] : memref<8x16xf32, #tpu.memory_space<vmem>>, vector<8x16xf32>
    %c0_1 = arith.constant 0 : index
    %c0_2 = arith.constant 0 : index
    %c0_3 = arith.constant 0 : index
    %1 = vector.load %arg2[%c0_1, %c0_2, %c0_3] : memref<1x16x64xf32, #tpu.memory_space<vmem>>, vector<1x16x64xf32>
    %2 = vector.shape_cast %1 : vector<1x16x64xf32> to vector<16x64xf32>
    %cst = arith.constant dense<0.000000e+00> : vector<8x64xf32>
    %3 = tpu.matmul %0, %2, %cst {dimension_numbers = #tpu.dot_dimension_numbers<[1], [0], [0], [1], [0, 0, 1, 1], [], []>} : vector<8x16xf32>, vector<16x64xf32>, vector<8x64xf32> -> vector<8x64xf32>
    %c0_4 = arith.constant 0 : index
    %c0_5 = arith.constant 0 : index
    %4 = vector.load %arg4[%c0_4, %c0_5] : memref<8x1xf32, #tpu.memory_space<vmem>>, vector<8x1xf32>
    %5 = vector.broadcast %4 : vector<8x1xf32> to vector<8x64xf32>
    %6 = arith.mulf %3, %5 : vector<8x64xf32>
    %c0_6 = arith.constant 0 : index
    %c0_7 = arith.constant 0 : index
    %7 = vector.load %arg5[%c0_6, %c0_7] : memref<8x1xf32, #tpu.memory_space<vmem>>, vector<8x1xf32>
    %8 = vector.broadcast %7 : vector<8x1xf32> to vector<8x64xf32>
    %9 = arith.addf %6, %8 : vector<8x64xf32>
    %c0_8 = arith.constant 0 : index
    %c0_9 = arith.constant 0 : index
    %c0_10 = arith.constant 0 : index
    %10 = vector.load %arg6[%c0_8, %c0_9, %c0_10] : memref<1x8x64xf32, #tpu.memory_space<vmem>>, vector<1x8x64xf32>
    %11 = vector.shape_cast %10 : vector<1x8x64xf32> to vector<8x64xf32>
    %12 = vector.shape_cast %9 : vector<8x64xf32> to vector<1x8x64xf32>
    tpu.vector_store %arg6[%c0_8, %c0_9, %c0_10], %12 {strides = array<i32>} : memref<1x8x64xf32, #tpu.memory_space<vmem>>, vector<1x8x64xf32>,
    return
  }
  func.func @transform_0(%arg0: i32, %arg1: i32) -> (i32, i32, i32) {
    %c0_i32 = arith.constant 0 : i32
    %c0_i32_0 = arith.constant 0 : i32
    return %arg0, %c0_i32, %arg1 : i32, i32, i32
  }
  func.func @transform_1(%arg0: i32, %arg1: i32) -> (i32, i32) {
    %c0_i32 = arith.constant 0 : i32
    %c0_i32_0 = arith.constant 0 : i32
    %c0_i32_1 = arith.constant 0 : i32
    return %c0_i32, %c0_i32_0 : i32, i32
  }
  func.func @transform_2(%arg0: i32, %arg1: i32) -> (i32, i32) {
    %c0_i32 = arith.constant 0 : i32
    %c0_i32_0 = arith.constant 0 : i32
    %c0_i32_1 = arith.constant 0 : i32
    return %c0_i32, %c0_i32_0 : i32, i32
  }
  func.func @transform_3(%arg0: i32, %arg1: i32) -> (i32, i32) {
    %c0_i32 = arith.constant 0 : i32
    %c0_i32_0 = arith.constant 0 : i32
    %c0_i32_1 = arith.constant 0 : i32
    return %c0_i32, %c0_i32_0 : i32, i32
  }
  func.func @transform_4(%arg0: i32, %arg1: i32) -> (i32, i32, i32) {
    %c0_i32 = arith.constant 0 : i32
    %c0_i32_0 = arith.constant 0 : i32
    return %arg0, %c0_i32, %arg1 : i32, i32, i32
  }
}

</mosaic_0001>

<bundles_post_ra>
// kernel: downsample_block.2
= control target key start
LH: loop header
LB: loop body
LE: loop exit
PB: predicated region body
PF: predicated region fallthrough
CT: control target
= control target key end

     0   :  { %s495_s12 = smov 0   ;;  %s497_s13 = smov 0   ;;  %s538_s0 = inlined_call_operand.vmem [shape: f32[2,16,64], index: 0, kind: input, shape index: {}]   ;;  %s539_s1 = inlined_call_operand.vmem [shape: f32[8,16], index: 1, kind: input, shape index: {}]   ;;  %s540_s2 = inlined_call_operand.vmem [shape: f32[2,8,1], index: 2, kind: output, shape index: {0}]   ;;  %s541_s3 = inlined_call_operand.vmem [shape: f32[2,8,1], index: 3, kind: output, shape index: {1}]  }
   0x1   :  { %s499_s14 = smov 0  }
   0x2 LB: > { %s26_s15 = sadd.s32 1, %s467_s13  ;;  %p404_p0 = scmp.ge.s32.totalorder %s471_s14, 1  ;;  %s471_s14 = sphi %s499_s14, %s14_s14   ;;  %s467_s13 = sphi %s497_s13, %s543_s13   ;;  %s463_s12 = sphi %s495_s12, %s542_s12  }
   0x3   : > { %p28_p1 = scmp.ge.s32.totalorder %s26_s15, 2  ;;  %p157_p2 = scmp.lt.s32.totalorder %s471_s14, 3 }
   0x5   : > { %s545_s15 = smov (%p28_p1, %s26_s15), 0  ;;  %p158_p3 = pnand %p404_p0, %p157_p2 }
   0x6   : > { %p187_p4 = scmp.lt.s32.totalorder (!%p158_p3), %s463_s12, 1 }
   0x7   : > { %161 = sbr.rel (%p158_p3) target bundleno = 358 (0x166), region = 28 }
   0xc   : > { %v473_v0 = vmov 0.0   ;;  %vm474_vm0 = vmmov 0   ;;  %s547_s12 = smov (!%p187_p4, %s463_s12), 1  ;;  %v210_v3 = vld [vmem:[%s539_s1] sm:$0xff]  ;;  %vm213_vm1 = vcmask 130048   ;;  %vm207_vm2 = vcmask 7168  }
   0xd   : > { %416 = vmatprep.subr.mxu0 %v473_v0  ;;  %420 = vmatprep.mubr.msk.f32.mxu0 %vm474_vm0, %v473_v0  ;;  %s412_s16 = sshll.u32 %s547_s12, 4  ;;  %s407_s22 = sshll.u32 %s547_s12, 3  ;;  %vm288_vm3 = vcmask 523264  }
   0xe   : > { %s194_s19 = scalar_lea.vmem %s538_s0, %s412_s16  ;;  %s198_s25 = scalar_lea.vmem %s540_s2, %s407_s22 }
   0xf   : > { %v212_v1 = vld [vmem:[%s194_s19 + $0x8] sm:$0xff]  ;;  %v211_v2 = vld [vmem:[%s194_s19] sm:$0xff]  ;;  %208 = vst.msk [vmem:[%s198_s25] sm:$0xff] %vm207_vm2, %v473_v0  ;;  %s202_s28 = scalar_lea.vmem %s541_s3, %s407_s22 }
  0x10   : > { %417 = vmatpush3.msra.mxu0 %v212_v1  ;;  %209 = vst.msk [vmem:[%s202_s28] sm:$0xff] %vm207_vm2, %v473_v0 }
  0x11   : > { %418 = vmatprep.subr.mxu0 %v473_v0 }
  0x12   : > { %419 = vmatpush3.msra.mxu0 %v211_v2 }
  0x13   : > { %421 = vmatmul.mubr.msk.f32.vlgmr.msra.gmra.mxu0 %vm213_vm1, %v210_v3 }
  0x16   : > { %v287_v9 = vld [vmem:[%s198_s25] sm:$0xff] }
  0x17   : > { %v295_v12 = vld [vmem:[%s202_s28] sm:$0xff] }
  0xd3   : > { %v283_v4 = vpop.f32.mrf.mxu0 }
  0xd4   : > { %v296_v5 = vmul.f32 %v283_v4, %v283_v4  ;;  %v289_v6 = vsel %vm288_vm3, %v283_v4, 0.0 }
  0xd5   : > { %290 = vadd.xlane.f32.xlu0 %v289_v6  ;;  %v422_v7 = vpop.f32.mrf.mxu0 }
  0xd6   : > { %v297_v8 = vsel %vm288_vm3, %v296_v5, 0.0 }
  0xd9   : > { %298 = vadd.xlane.f32.xlu0 %v297_v8 }
 0x15e   : > { %v291_v10 = vpop.xlane.xlu0 %290 }
 0x15f   : > { %v292_v11 = vadd.f32 %v291_v10, %v287_v9 }
 0x161   : > { %294 = vst.msk [vmem:[%s198_s25] sm:$0xff] %vm207_vm2, %v292_v11 }
 0x162   : > { %v299_v13 = vpop.xlane.xlu0 %298 }
 0x163   : > { %v300_v14 = vadd.f32 %v299_v13, %v295_v12 }
 0x165   : > { %301 = vst.msk [vmem:[%s202_s28] sm:$0xff] %vm207_vm2, %v300_v14 }
 0x166 PF: > { %s14_s14 = sadd.s32 1, %s471_s14   ;;  %s542_s12 = smov %s467_s13 }
 0x167   : > { %p11_p5 = scmp.ge.s32.totalorder %s14_s14, 4   ;;  %s543_s13 = smov %s545_s15 }
 0x169   :  { %13 = sbr.rel (!%p11_p5) target bundleno = 2 (0x2), region = 74 }

// kernel: downsample_block.3
= control target key start
LH: loop header
LB: loop body
LE: loop exit
PB: predicated region body
PF: predicated region fallthrough
CT: control target
= control target key end

     0   :  { %s499_s15 = smov 0   ;;  %s501_s16 = smov 0   ;;  %s541_s0 = inlined_call_operand.vmem [shape: f32[2,16,64], index: 0, kind: input, shape index: {}]   ;;  %s542_s1 = inlined_call_operand.vmem [shape: f32[8,16], index: 1, kind: input, shape index: {}]   ;;  %s543_s2 = inlined_call_operand.vmem [shape: f32[8,1], index: 2, kind: input, shape index: {}]   ;;  %s544_s3 = inlined_call_operand.vmem [shape: f32[8,1], index: 3, kind: input, shape index: {}]   ;;  %s545_s4 = inlined_call_operand.vmem [shape: f32[2,8,64], index: 4, kind: output, shape index: {}]  }
   0x1   :  { %s503_s17 = smov 0  }
   0x2 LB: > { %s26_s18 = sadd.s32 1, %s465_s16  ;;  %p401_p0 = scmp.ge.s32.totalorder %s469_s17, 1  ;;  %s469_s17 = sphi %s503_s17, %s14_s17   ;;  %s465_s16 = sphi %s501_s16, %s547_s16   ;;  %s461_s15 = sphi %s499_s15, %s546_s15  }
   0x3   : > { %p28_p1 = scmp.ge.s32.totalorder %s26_s18, 2  ;;  %p181_p2 = scmp.lt.s32.totalorder %s469_s17, 3 }
   0x5   : > { %s549_s18 = smov (%p28_p1, %s26_s18), 0  ;;  %p182_p3 = pnand %p401_p0, %p181_p2 }
   0x6   : > { %p212_p4 = scmp.lt.s32.totalorder (!%p182_p3), %s461_s15, 1 }
   0x7   : > { %185 = sbr.rel (%p182_p3) target bundleno = 217 (0xd9), region = 36 }
   0xc   : > { %v471_v0 = vmov 0.0   ;;  %vm472_vm0 = vmmov 0   ;;  %v304_v1 = vld [vmem:[%s543_s2] sm:$0xff]  ;;  %s551_s15 = smov (!%p212_p4, %s461_s15), 1  ;;  %v473_v2 = vmov 0   ;;  %vm230_vm1 = vcmask 130048  }
   0xd   : > { %412 = vmatprep.subr.mxu0 %v471_v0  ;;  %416 = vmatprep.mubr.msk.f32.mxu0 %vm472_vm0, %v471_v0  ;;  %s408_s21 = sshll.u32 %s551_s15, 4  ;;  %v311_v3 = vld [vmem:[%s544_s3] sm:$0xff]  ;;  %s404_s29 = sshll.u32 %s551_s15, 3  ;;  %vm318_vm2 = vcmask 523264  }
   0xe   : > { %446 = vset.pattern.permute.xlu0 %v473_v2  ;;  %s219_s26 = scalar_lea.vmem %s541_s0, %s408_s21  ;;  %v227_v6 = vld [vmem:[%s542_s1] sm:$0xff]  ;;  %s226_s6 = scalar_lea.vmem %s545_s4, %s404_s29 }
   0xf   : > { %307 = vperm.xlu0 %446, %v304_v1   ;;  %v229_v4 = vld [vmem:[%s219_s26 + $0x8] sm:$0xff]  ;;  %v228_v5 = vld [vmem:[%s219_s26] sm:$0xff] }
  0x10   : > { %413 = vmatpush3.msra.mxu0 %v229_v4 }
  0x11   : > { %414 = vmatprep.subr.mxu0 %v471_v0 }
  0x12   : > { %415 = vmatpush3.msra.mxu0 %v228_v5 }
  0x13   : > { %314 = vperm.xlu0 %446, %v311_v3   ;;  %417 = vmatmul.mubr.msk.f32.vlgmr.msra.gmra.mxu0 %vm230_vm1, %v227_v6 }
  0x8a   : > { %v308_v7 = vpop.permute.xlu0 %307 }
  0x8e   : > { %v315_v10 = vpop.permute.xlu0 %314 }
  0xd3   : > { %v300_v8 = vpop.f32.mrf.mxu0 }
  0xd4   : > { %v310_v9 = vmul.f32 %v308_v7, %v300_v8 }
  0xd5   : > { %v418_v11 = vpop.f32.mrf.mxu0 }
  0xd6   : > { %v317_v12 = vadd.f32 %v315_v10, %v310_v9 }
  0xd8   : > { %319 = vst.msk [vmem:[%s226_s6] sm:$0xff] %vm318_vm2, %v317_v12 }
  0xd9 PF: > { %s14_s17 = sadd.s32 1, %s469_s17   ;;  %s546_s15 = smov %s465_s16 }
  0xda   : > { %p11_p5 = scmp.ge.s32.totalorder %s14_s17, 4   ;;  %s547_s16 = smov %s549_s18 }
  0xdc   :  { %13 = sbr.rel (!%p11_p5) target bundleno = 2 (0x2), region = 66 }

</bundles_post_ra>
